<compile_context>
chip_gen: v7x
topology: tpu7x:2x2x1
jax: 0.10.0
libtpu: 0.0.40
codegen_flags: <defaults>
</compile_context>

<pallas_src>
import functools

import jax
import jax.numpy as jnp
from jax.experimental import pallas as pl
from jax.experimental.pallas import tpu as pltpu


def _round_up(x, m):
    return (x + m - 1) // m * m


def world_predictor_kernel(x_ref, wf_ref, w2_ref, wl_ref, b_ref, out_ref,
                           *, h1_dim, rh_dim, h2_dim, out_lanes):
    """x_ref:  (tm, k_pad)  f32   lane-dense [state | action | 0...]
       wf_ref: (k_pad, h1_dim+rh_dim) bf16   fused first-layer weights
       w2_ref: (h1_dim, h2_dim)      bf16   transition layer 2
       wl_ref: (h2_dim+rh_dim, out_lanes) bf16 fused last-layer (block-diag)
       b_ref:  (1, h1+rh + h2 + out_lanes) f32 packed biases
       out_ref:(tm, out_lanes) f32  lane-dense [state | reward | 0...]"""
    nf = h1_dim + rh_dim

    x_bf = x_ref[...].astype(jnp.bfloat16)                       # (tm, k_pad)

    # Fused first layers of both heads: one K=k_pad MXU contraction.
    y = jnp.dot(x_bf, wf_ref[...], preferred_element_type=jnp.float32)
    y = jnp.maximum(y + b_ref[:, :nf], 0.0)                      # (tm, nf) f32
    h1 = y[:, :h1_dim]                                           # (tm, 512)
    r1 = y[:, h1_dim:nf]                                         # (tm, 128)

    # Transition layer 2.
    h2 = jnp.dot(h1.astype(jnp.bfloat16), w2_ref[...],
                 preferred_element_type=jnp.float32)
    h2 = jnp.maximum(h2 + b_ref[:, nf:nf + h2_dim], 0.0)         # (tm, 256) f32

    # Fused final projection: [h2 | r1] @ block-diag(w3p, rw2@lane input_dim)
    # + (b3 padded, with rb2 at lane input_dim) -> lane-dense state+reward slab.
    hr = jnp.concatenate([h2, r1], axis=-1).astype(jnp.bfloat16)  # (tm, 384)
    out = jnp.dot(hr, wl_ref[...], preferred_element_type=jnp.float32)
    out_ref[...] = out + b_ref[:, nf + h2_dim:nf + h2_dim + out_lanes]


def init_params(key, input_dim):
    """Deterministic synthetic params matching PyTorch nn.Linear init.
    Weights stored pre-transposed as (in, out) for x @ W; biases (1, out)."""
    def linear(key, fan_in, fan_out):
        kw, kb = jax.random.split(key)
        bound = 1.0 / jnp.sqrt(float(fan_in))
        w = jax.random.uniform(kw, (fan_in, fan_out), jnp.float32, -bound, bound)
        b = jax.random.uniform(kb, (1, fan_out), jnp.float32, -bound, bound)
        return w, b

    keys = jax.random.split(key, 5)
    w1, b1 = linear(keys[0], input_dim + 1, 512)
    w2, b2 = linear(keys[1], 512, 256)
    w3, b3 = linear(keys[2], 256, input_dim)
    rw1, rb1 = linear(keys[3], input_dim, 128)
    rw2, rb2 = linear(keys[4], 128, 1)
    return (w1, b1, w2, b2, w3, b3, rw1, rb1, rw2, rb2)


def prepare_kernel_params(params, input_dim):
    """One-time layout prep:
       * wfirst (k_pad, 640) bf16: rows [0,33) cols [0,512) = w1 (K padded to
         128), rows [0,32) cols [512,640) = rw1 (reward head sees no action).
       * wlast (384, 128) bf16: rows [0,256) = w3 zero-padded to 128 lanes,
         rows [256,384) = rw2 placed in column `input_dim`.
       * biases (1, 1024) f32: [b1 | rb1 | b2 | b3 padded with rb2 at lane
         input_dim] packed into a single DMA."""
    (w1, b1, w2, b2, w3, b3, rw1, rb1, rw2, rb2) = params
    h1_dim, h2_dim, rh_dim = w1.shape[1], w2.shape[1], rw1.shape[1]
    k_pad = _round_up(input_dim + 1, 128)
    out_lanes = _round_up(input_dim + 1, 128)

    wfirst = jnp.zeros((k_pad, h1_dim + rh_dim), jnp.float32)
    wfirst = wfirst.at[:input_dim + 1, :h1_dim].set(w1)
    wfirst = wfirst.at[:input_dim, h1_dim:].set(rw1)

    wlast = jnp.zeros((h2_dim + rh_dim, out_lanes), jnp.float32)
    wlast = wlast.at[:h2_dim, :input_dim].set(w3)
    wlast = wlast.at[h2_dim:, input_dim].set(rw2[:, 0])

    blast = jnp.zeros((1, out_lanes), jnp.float32)
    blast = blast.at[:, :input_dim].set(b3)
    blast = blast.at[:, input_dim].set(rb2[0, 0])        # <- rb2 fix

    biases = jnp.concatenate([b1, rb1, b2, blast], axis=1)   # (1, 640+256+128)

    return (wfirst.astype(jnp.bfloat16),
            w2.astype(jnp.bfloat16),
            wlast.astype(jnp.bfloat16),
            biases)


def world_predictor(last_state, action, kernel_params):
    """last_state: (B, input_dim) f32, action: (B, 1) f32."""
    B, input_dim = last_state.shape
    wfirst, w2, wlast, biases = kernel_params
    k_pad = wfirst.shape[0]
    h1_dim = w2.shape[0]
    rh_dim = wfirst.shape[1] - h1_dim
    h2_dim = w2.shape[1]
    out_lanes = wlast.shape[1]

    # Batch tile: multiple of 8, capped at 64 to keep h1 within the vreg file;
    # for moderate B prefer >=2 grid steps so v7x can shard across its 2 TCs.
    tm = min(_round_up(B, 8), 64)
    if B > 8:
        tm = min(tm, _round_up((B + 1) // 2, 8))
    B_pad = _round_up(B, tm)
    grid = (B_pad // tm,)

    # Lane-dense padded LHS: state in lanes [0, input_dim), action in lane
    # input_dim, zeros elsewhere (folds the action column into the K dim).
    x = jnp.zeros((B_pad, k_pad), jnp.float32)
    x = x.at[:B, :input_dim].set(last_state)
    x = x.at[:B, input_dim].set(action[:, 0])

    flops = 2 * B_pad * (k_pad * (h1_dim + rh_dim)
                         + h1_dim * h2_dim
                         + (h2_dim + rh_dim) * out_lanes)
    bytes_accessed = (
        sum(int(p.size) * p.dtype.itemsize for p in kernel_params)
        + (B_pad * k_pad + B_pad * out_lanes) * 4
    )

    in_specs = [
        pl.BlockSpec((tm, k_pad), lambda i: (i, 0)),
        # Constant block index -> weights/biases DMA'd once, VMEM-resident.
        pl.BlockSpec(wfirst.shape, lambda i: (0, 0)),
        pl.BlockSpec(w2.shape, lambda i: (0, 0)),
        pl.BlockSpec(wlast.shape, lambda i: (0, 0)),
        pl.BlockSpec(biases.shape, lambda i: (0, 0)),
    ]

    out = pl.pallas_call(
        functools.partial(world_predictor_kernel,
                          h1_dim=h1_dim, rh_dim=rh_dim,
                          h2_dim=h2_dim, out_lanes=out_lanes),
        grid=grid,
        in_specs=in_specs,
        out_specs=pl.BlockSpec((tm, out_lanes), lambda i: (i, 0)),
        out_shape=jax.ShapeDtypeStruct((B_pad, out_lanes), jnp.float32),
        compiler_params=pltpu.CompilerParams(
            dimension_semantics=("parallel",)),
        cost_estimate=pl.CostEstimate(
            flops=flops, transcendentals=0, bytes_accessed=bytes_accessed),
    )(x, wfirst, w2, wlast, biases)

    state = out[:B, :input_dim]
    reward = out[:B, input_dim:input_dim + 1]
    return state, reward


def world_predictor_ref(last_state, action, params):
    (w1, b1, w2, b2, w3, b3, rw1, rb1, rw2, rb2) = params
    lsa = jnp.concatenate([last_state, action], axis=1)
    h = jnp.maximum(lsa @ w1 + b1, 0.0)
    h = jnp.maximum(h @ w2 + b2, 0.0)
    state = h @ w3 + b3
    r = jnp.maximum(last_state @ rw1 + rb1, 0.0)
    reward = r @ rw2 + rb2
    return state, reward


if __name__ == "__main__":
    B = 8
    INPUT_DIM = 32

    key = jax.random.PRNGKey(0)
    k_params, k_state, k_action = jax.random.split(key, 3)

    params = init_params(k_params, INPUT_DIM)
    kernel_params = prepare_kernel_params(params, INPUT_DIM)

    last_state = jax.random.normal(k_state, (B, INPUT_DIM), jnp.float32)
    action = jax.random.normal(k_action, (B, 1), jnp.float32)

    state, reward = world_predictor(last_state, action, kernel_params)
    jax.block_until_ready((state, reward))

    # Sanity check against a plain-JAX f32 reference of the PyTorch forward.
    # Tolerance loosened because matmul operands run in bf16 (f32 accumulation).
    state_ref, reward_ref = world_predictor_ref(last_state, action, params)
    assert state.shape == (B, INPUT_DIM) and reward.shape == (B, 1)
    assert jnp.allclose(state, state_ref, atol=5e-2, rtol=5e-2)
    assert jnp.allclose(reward, reward_ref, atol=5e-2, rtol=5e-2)

    print("KERNEL_OK")
</pallas_src>

<mosaic_0001>
module attributes {stable_mosaic.version = 11 : i64} {
  func.func @world_predictor_kernel(%arg0: i32, %arg1: memref<8x128xf32, #tpu.memory_space<vmem>>, %arg2: memref<128x640xbf16, #tpu.memory_space<vmem>>, %arg3: memref<512x256xbf16, #tpu.memory_space<vmem>>, %arg4: memref<384x128xbf16, #tpu.memory_space<vmem>>, %arg5: memref<1x1024xf32, #tpu.memory_space<vmem>>, %arg6: memref<8x128xf32, #tpu.memory_space<vmem>>) attributes {dimension_semantics = [#tpu.dimension_semantics<parallel>], iteration_bounds = array<i64: 1>, scalar_prefetch = 0 : i64, scratch_operands = 0 : i64, tpu.core_type = #tpu.core_type<tc>, window_params = [{transform_indices = @transform_0, window_bounds = array<i64: 8, 128>}, {pipeline_mode = #tpu.pipeline_mode<synchronous>, transform_indices = @transform_1, window_bounds = array<i64: 128, 640>}, {pipeline_mode = #tpu.pipeline_mode<synchronous>, transform_indices = @transform_2, window_bounds = array<i64: 512, 256>}, {pipeline_mode = #tpu.pipeline_mode<synchronous>, transform_indices = @transform_3, window_bounds = array<i64: 384, 128>}, {pipeline_mode = #tpu.pipeline_mode<synchronous>, transform_indices = @transform_4, window_bounds = array<i64: 1, 1024>}, {transform_indices = @transform_5, window_bounds = array<i64: 8, 128>}]} {
    %c0 = arith.constant 0 : index
    %c0_0 = arith.constant 0 : index
    %0 = vector.load %arg1[%c0, %c0_0] : memref<8x128xf32, #tpu.memory_space<vmem>>, vector<8x128xf32>
    %1 = arith.truncf %0 : vector<8x128xf32> to vector<8x128xbf16>
    %c0_1 = arith.constant 0 : index
    %c0_2 = arith.constant 0 : index
    %2 = vector.load %arg2[%c0_1, %c0_2] : memref<128x640xbf16, #tpu.memory_space<vmem>>, vector<128x640xbf16>
    %cst = arith.constant dense<0.000000e+00> : vector<8x640xf32>
    %3 = tpu.matmul %1, %2, %cst {dimension_numbers = #tpu.dot_dimension_numbers<[1], [0], [0], [1], [0, 0, 1, 1], [], []>} : vector<8x128xbf16>, vector<128x640xbf16>, vector<8x640xf32> -> vector<8x640xf32>
    %c0_3 = arith.constant 0 : index
    %c0_4 = arith.constant 0 : index
    %4 = vector.load %arg5[%c0_3, %c0_4] : memref<1x1024xf32, #tpu.memory_space<vmem>>, vector<1x640xf32>
    %5 = vector.broadcast %4 : vector<1x640xf32> to vector<8x640xf32>
    %6 = arith.addf %3, %5 : vector<8x640xf32>
    %cst_5 = arith.constant 0.000000e+00 : f32
    %7 = vector.broadcast %cst_5 : f32 to vector<8x640xf32>
    %8 = arith.maximumf %6, %7 : vector<8x640xf32>
    %9 = vector.extract_strided_slice %8 {offsets = [0, 0], sizes = [8, 512], strides = [1, 1]} : vector<8x640xf32> to vector<8x512xf32>
    %10 = vector.extract_strided_slice %8 {offsets = [0, 512], sizes = [8, 128], strides = [1, 1]} : vector<8x640xf32> to vector<8x128xf32>
    %11 = arith.truncf %9 : vector<8x512xf32> to vector<8x512xbf16>
    %c0_6 = arith.constant 0 : index
    %c0_7 = arith.constant 0 : index
    %12 = vector.load %arg3[%c0_6, %c0_7] : memref<512x256xbf16, #tpu.memory_space<vmem>>, vector<512x256xbf16>
    %cst_8 = arith.constant dense<0.000000e+00> : vector<8x256xf32>
    %13 = tpu.matmul %11, %12, %cst_8 {dimension_numbers = #tpu.dot_dimension_numbers<[1], [0], [0], [1], [0, 0, 1, 1], [], []>} : vector<8x512xbf16>, vector<512x256xbf16>, vector<8x256xf32> -> vector<8x256xf32>
    %c0_9 = arith.constant 0 : index
    %c640 = arith.constant 640 : index
    %14 = vector.load %arg5[%c0_9, %c640] : memref<1x1024xf32, #tpu.memory_space<vmem>>, vector<1x256xf32>
    %15 = vector.broadcast %14 : vector<1x256xf32> to vector<8x256xf32>
    %16 = arith.addf %13, %15 : vector<8x256xf32>
    %cst_10 = arith.constant 0.000000e+00 : f32
    %17 = vector.broadcast %cst_10 : f32 to vector<8x256xf32>
    %18 = arith.maximumf %16, %17 : vector<8x256xf32>
    %19 = tpu.concatenate %18, %10 in 1 : vector<8x256xf32>, vector<8x128xf32> -> vector<8x384xf32>
    %20 = arith.truncf %19 : vector<8x384xf32> to vector<8x384xbf16>
    %c0_11 = arith.constant 0 : index
    %c0_12 = arith.constant 0 : index
    %21 = vector.load %arg4[%c0_11, %c0_12] : memref<384x128xbf16, #tpu.memory_space<vmem>>, vector<384x128xbf16>
    %cst_13 = arith.constant dense<0.000000e+00> : vector<8x128xf32>
    %22 = tpu.matmul %20, %21, %cst_13 {dimension_numbers = #tpu.dot_dimension_numbers<[1], [0], [0], [1], [0, 0, 1, 1], [], []>} : vector<8x384xbf16>, vector<384x128xbf16>, vector<8x128xf32> -> vector<8x128xf32>
    %c0_14 = arith.constant 0 : index
    %c896 = arith.constant 896 : index
    %23 = vector.load %arg5[%c0_14, %c896] : memref<1x1024xf32, #tpu.memory_space<vmem>>, vector<1x128xf32>
    %24 = vector.broadcast %23 : vector<1x128xf32> to vector<8x128xf32>
    %25 = arith.addf %22, %24 : vector<8x128xf32>
    %c0_15 = arith.constant 0 : index
    %c0_16 = arith.constant 0 : index
    %26 = vector.load %arg6[%c0_15, %c0_16] : memref<8x128xf32, #tpu.memory_space<vmem>>, vector<8x128xf32>
    tpu.vector_store %arg6[%c0_15, %c0_16], %25 {strides = array<i32>} : memref<8x128xf32, #tpu.memory_space<vmem>>, vector<8x128xf32>,
    return
  }
  func.func @transform_0(%arg0: i32) -> (i32, i32) {
    %c0_i32 = arith.constant 0 : i32
    %c0_i32_0 = arith.constant 0 : i32
    return %arg0, %c0_i32 : i32, i32
  }
  func.func @transform_1(%arg0: i32) -> (i32, i32) {
    %c0_i32 = arith.constant 0 : i32
    %c0_i32_0 = arith.constant 0 : i32
    %c0_i32_1 = arith.constant 0 : i32
    return %c0_i32, %c0_i32_0 : i32, i32
  }
  func.func @transform_2(%arg0: i32) -> (i32, i32) {
    %c0_i32 = arith.constant 0 : i32
    %c0_i32_0 = arith.constant 0 : i32
    %c0_i32_1 = arith.constant 0 : i32
    return %c0_i32, %c0_i32_0 : i32, i32
  }
  func.func @transform_3(%arg0: i32) -> (i32, i32) {
    %c0_i32 = arith.constant 0 : i32
    %c0_i32_0 = arith.constant 0 : i32
    %c0_i32_1 = arith.constant 0 : i32
    return %c0_i32, %c0_i32_0 : i32, i32
  }
  func.func @transform_4(%arg0: i32) -> (i32, i32) {
    %c0_i32 = arith.constant 0 : i32
    %c0_i32_0 = arith.constant 0 : i32
    %c0_i32_1 = arith.constant 0 : i32
    return %c0_i32, %c0_i32_0 : i32, i32
  }
  func.func @transform_5(%arg0: i32) -> (i32, i32) {
    %c0_i32 = arith.constant 0 : i32
    %c0_i32_0 = arith.constant 0 : i32
    return %arg0, %c0_i32 : i32, i32
  }
}

</mosaic_0001>

<bundles_post_ra>
// kernel: tpu_custom_call.1
= control target key start
LH: loop header
LB: loop body
LE: loop exit
PB: predicated region body
PF: predicated region fallthrough
CT: control target
= control target key end

     0   :  { %10 = vsyncpa [#allocation3], 0  ;;  %s1954_s0 = inlined_call_operand.hbm [shape: f32[8,128], index: 0, kind: input, shape index: {}]   ;;  %s1955_s1 = inlined_call_operand.hbm [shape: bf16[128,640], index: 1, kind: input, shape index: {}]   ;;  %s1956_s2 = inlined_call_operand.hbm [shape: bf16[512,256], index: 2, kind: input, shape index: {}]   ;;  %s1957_s3 = inlined_call_operand.hbm [shape: bf16[384,128], index: 3, kind: input, shape index: {}]   ;;  %s1958_s4 = inlined_call_operand.vmem [shape: f32[1,1024], index: 4, kind: input, shape index: {}]   ;;  %s1959_s5 = inlined_call_operand.hbm [shape: f32[8,128], index: 5, kind: output, shape index: {}]  }
   0x1   :  { %11 = vsyncpa [#allocation6], 0 }
   0x2   :  { %12 = vsyncpa [#allocation9], 0 }
   0x3   :  { %13 = vsyncpa [#allocation4], 0  ;;  %s1794_s18 = smov [#allocation5]   ;;  %s1676_s22 = scalar_lea.hbm %s1955_s1, 5120 }
   0x4   :  { %s29_s19 = sshll.u32 %s1794_s18, 4  ;;  %p1677_p0 = scmp.ne.s32.totalorder %s1955_s1, %s1676_s22  ;;  %s30_s19 = int_to_ptr.vmem [resolvable:$true] %s29_s19 }
   0x5   :  { %p1680_p1 = scmp.lt.u32.totalorder %s1676_s22, %s1955_s1 }
   0x7   :  { %p1682_p2 = pnand %p1680_p1, %p1677_p0 }
   0x9   :  { %1685 = shalt.err (!%p1682_p2)
}
   0xa   :  { %s1686_s27 = scalar_lea.vmem %s30_s19, 5120  ;;  %p1691_p4 = scmp.lt.s32.totalorder %s30_s19, %s30_s19 }
   0xb   :  { %p1687_p3 = scmp.ne.s32.totalorder %s30_s19, %s1686_s27  ;;  %p1692_p5 = scmp.lt.s32.totalorder %s1686_s27, %s1686_s27 }
   0xd   :  { %p1693_p6 = por %p1692_p5, %p1691_p4 }
   0xf   :  { %p1694_p7 = pnand %p1693_p6, %p1687_p3 }
  0x11   :  { %1697 = shalt.err (!%p1694_p7)
}
  0x12   :  { %s1795_s28 = smov 320   ;;  %s1796_s29 = smov 20  }
  0x13   :  { %35 = dma.hbm_to_vmem [thread:$0]  %s1955_s1, 5120, %s30_s19, [#allocation6], %s1795_s28, %s1795_s28, %s1796_s29  }
  0x14   :  { %s1797_s7 = smov [#allocation2]   ;;  %s1798_s9 = smov [#allocation7]  }
  0x15   :  { %s20_s8 = sshll.u32 %s1797_s7, 4  ;;  %s41_s10 = sshll.u32 %s1798_s9, 4  ;;  %s21_s8 = int_to_ptr.vmem [resolvable:$true] %s20_s8  ;;  %s42_s10 = int_to_ptr.vmem [resolvable:$true] %s41_s10 }
  0x16   :  { %s1698_s13 = scalar_lea.hbm %s1954_s0, 128 }
  0x17   :  { %p1699_p8 = scmp.ne.s32.totalorder %s1954_s0, %s1698_s13  ;;  %p1702_p9 = scmp.lt.u32.totalorder %s1698_s13, %s1954_s0 }
  0x19   :  { %p1704_p10 = pnand %p1702_p9, %p1699_p8 }
  0x1b   :  { %1707 = shalt.err (!%p1704_p10)
}
  0x1c   :  { %s1708_s1 = scalar_lea.vmem %s21_s8, 128  ;;  %p1713_p12 = scmp.lt.s32.totalorder %s21_s8, %s21_s8 }
  0x1d   :  { %p1709_p11 = scmp.ne.s32.totalorder %s21_s8, %s1708_s1  ;;  %p1714_p13 = scmp.lt.s32.totalorder %s1708_s1, %s1708_s1 }
  0x1f   :  { %p1715_p0 = por %p1714_p13, %p1713_p12 }
  0x21   :  { %p1716_p1 = pnand %p1715_p0, %p1709_p11 }
  0x23   :  { %1719 = shalt.err (!%p1716_p1)
}
  0x24   :  { %23 = dma.hbm_to_vmem [thread:$0]  %s1954_s0, 128, %s21_s8, [#allocation3]  }
  0x25   :  { %s1720_s22 = scalar_lea.hbm %s1956_s2, 8192 }
  0x26   :  { %p1721_p2 = scmp.ne.s32.totalorder %s1956_s2, %s1720_s22  ;;  %p1724_p3 = scmp.lt.u32.totalorder %s1720_s22, %s1956_s2 }
  0x28   :  { %p1726_p4 = pnand %p1724_p3, %p1721_p2 }
  0x2a   :  { %1729 = shalt.err (!%p1726_p4)
}
  0x2b   :  { %s1730_s27 = scalar_lea.vmem %s42_s10, 8192  ;;  %p1735_p6 = scmp.lt.s32.totalorder %s42_s10, %s42_s10 }
  0x2c   :  { %p1731_p5 = scmp.ne.s32.totalorder %s42_s10, %s1730_s27  ;;  %p1736_p7 = scmp.lt.s32.totalorder %s1730_s27, %s1730_s27 }
  0x2e   :  { %p1737_p8 = por %p1736_p7, %p1735_p6 }
  0x30   :  { %p1738_p9 = pnand %p1737_p8, %p1731_p5 }
  0x32   :  { %1741 = shalt.err (!%p1738_p9)
}
  0x33   :  { %s1799_s0 = smov 128   ;;  %s1800_s28 = smov 8  }
  0x34   :  { %47 = dma.hbm_to_vmem [thread:$0]  %s1956_s2, 8192, %s42_s10, [#allocation6], %s1799_s0, %s1799_s0, %s1800_s28  }
  0x35   :  { %s1801_s6 = smov [#allocation8]   ;;  %s1742_s11 = scalar_lea.hbm %s1957_s3, 3072 }
  0x36   :  { %s53_s7 = sshll.u32 %s1801_s6, 4  ;;  %p1743_p10 = scmp.ne.s32.totalorder %s1957_s3, %s1742_s11  ;;  %s54_s7 = int_to_ptr.vmem [resolvable:$true] %s53_s7 }
  0x37   :  { %p1746_p11 = scmp.lt.u32.totalorder %s1742_s11, %s1957_s3 }
  0x39   :  { %p1748_p12 = pnand %p1746_p11, %p1743_p10 }
  0x3b   :  { %1751 = shalt.err (!%p1748_p12)
}
  0x3c   :  { %s1752_s16 = scalar_lea.vmem %s54_s7, 3072  ;;  %p1757_p0 = scmp.lt.s32.totalorder %s54_s7, %s54_s7 }
  0x3d   :  { %p1753_p13 = scmp.ne.s32.totalorder %s54_s7, %s1752_s16  ;;  %p1758_p1 = scmp.lt.s32.totalorder %s1752_s16, %s1752_s16 }
  0x3f   :  { %p1759_p2 = por %p1758_p1, %p1757_p0 }
  0x41   :  { %p1760_p3 = pnand %p1759_p2, %p1753_p13 }
  0x43   :  { %1763 = shalt.err (!%p1760_p3)
}
  0x44   :  { %s1802_s2 = smov 64   ;;  %s1803_s10 = smov 4  }
  0x45   :  { %59 = dma.hbm_to_vmem [thread:$0]  %s1957_s3, 3072, %s54_s7, [#allocation9], %s1802_s2, %s1802_s2, %s1803_s10  }
  0x46   :  { %1786 = dma.done.wait [#allocation3], 128  }
  0x47   :  { %1787 = vsyncadd [#allocation3], 4294967168 }
  0x48   :  { %1788 = dma.done.wait [#allocation6], 13312  }
  0x49   :  { %1789 = vsyncadd [#allocation6], 4294953984 }
  0x4a   :  { %1790 = dma.done.wait [#allocation9], 3072  }
  0x4b   :  { %1791 = vsyncadd [#allocation9], 4294964224  ;;  %v1804_v0 = vmov 0   ;;  %v1500_v1 = vld [vmem:[#allocation5 + $0x4] ss:$20 sps:$4 sm:$0xff]   ;;  %vm1806_vm0 = vmmov 0  }
  0x4c   :  { %392 = vmatprep.mubr.bf16.mxu0 %v1804_v0  ;;  %433 = vmatprep.mubr.bf16.mxu1 %v1804_v0  ;;  %v1502_v2 = vld [vmem:[#allocation5] ss:$20 sps:$4 sm:$0xff]   ;;  %v1505_v4 = vld [vmem:[#allocation5 + $0x28] ss:$20 sps:$4 sm:$0xff]   ;;  %v1508_v6 = vld [vmem:[#allocation5 + $0x50] ss:$20 sps:$4 sm:$0xff]  }
  0x4d   :  { %360 = vmatprep.subr.bf16.mxu0 %v1500_v1  ;;  %v1503_v3 = vld [vmem:[#allocation5 + $0x2c] ss:$20 sps:$4 sm:$0xff]   ;;  %v1506_v5 = vld [vmem:[#allocation5 + $0x54] ss:$20 sps:$4 sm:$0xff]   ;;  %v1509_v7 = vld [vmem:[#allocation5 + $0x7c] ss:$20 sps:$4 sm:$0xff]  }
  0x4e   :  { %361 = vmatpush1.bf16.msra.mxu0 %v1502_v2  ;;  %v1511_v8 = vld [vmem:[#allocation5 + $0x78] ss:$20 sps:$4 sm:$0xff]   ;;  %v1526_v11 = vld [vmem:[#allocation5 + $0x8] ss:$20 sps:$4 sm:$0xff]   ;;  %v1514_v13 = vld [vmem:[#allocation5 + $0xa0] ss:$20 sps:$4 sm:$0xff]  }
  0x4f   :  { %362 = vmatprep.subr.bf16.mxu0 %v1503_v3  ;;  %v1512_v9 = vld [vmem:[#allocation5 + $0xa4] ss:$20 sps:$4 sm:$0xff]   ;;  %v1524_v10 = vld [vmem:[#allocation5 + $0xc] ss:$20 sps:$4 sm:$0xff]   ;;  %v1527_v12 = vld [vmem:[#allocation5 + $0x34] ss:$20 sps:$4 sm:$0xff]  }
  0x50   :  { %401 = vmatprep.subr.bf16.mxu1 %v1524_v10  ;;  %v1529_v14 = vld [vmem:[#allocation5 + $0x30] ss:$20 sps:$4 sm:$0xff]   ;;  %v1515_v16 = vld [vmem:[#allocation5 + $0xcc] ss:$20 sps:$4 sm:$0xff]   ;;  %v1517_v17 = vld [vmem:[#allocation5 + $0xc8] ss:$20 sps:$4 sm:$0xff]  }
  0x51   :  { %402 = vmatpush1.bf16.msra.mxu1 %v1526_v11  ;;  %v1530_v15 = vld [vmem:[#allocation5 + $0x5c] ss:$20 sps:$4 sm:$0xff]   ;;  %v1532_v18 = vld [vmem:[#allocation5 + $0x58] ss:$20 sps:$4 sm:$0xff]   ;;  %v1518_v20 = vld [vmem:[#allocation5 + $0xf4] ss:$20 sps:$4 sm:$0xff]  }
  0x52   :  { %363 = vmatpush1.bf16.msra.mxu0 %v1505_v4  ;;  %403 = vmatprep.subr.bf16.mxu1 %v1527_v12  ;;  %v1533_v19 = vld [vmem:[#allocation5 + $0x84] ss:$20 sps:$4 sm:$0xff]   ;;  %v1535_v22 = vld [vmem:[#allocation5 + $0x80] ss:$20 sps:$4 sm:$0xff]   ;;  %v1521_v24 = vld [vmem:[#allocation5 + $0x11c] ss:$20 sps:$4 sm:$0xff]  }
  0x53   :  { %364 = vmatprep.subr.bf16.mxu0 %v1506_v5  ;;  %v1520_v21 = vld [vmem:[#allocation5 + $0xf0] ss:$20 sps:$4 sm:$0xff]   ;;  %v1536_v23 = vld [vmem:[#allocation5 + $0xac] ss:$20 sps:$4 sm:$0xff]   ;;  %v75_v26 = vld [vmem:[#allocation2] sm:$0xff]  ;;  %v1805_v5 = vmov 0.0  }
  0x54   :  { %v1523_v25 = vld [vmem:[#allocation5 + $0x118] ss:$20 sps:$4 sm:$0xff]   ;;  %v1538_v27 = vld [vmem:[#allocation5 + $0xa8] ss:$20 sps:$4 sm:$0xff]   ;;  %v1886_v29 = vpack.c.bf16 %v75_v26, %v75_v26  ;;  %v1541_v30 = vld [vmem:[#allocation5 + $0xd0] ss:$20 sps:$4 sm:$0xff]  }
  0x55   :  { %404 = vmatpush1.bf16.msra.mxu1 %v1529_v14  ;;  %v1539_v28 = vld [vmem:[#allocation5 + $0xd4] ss:$20 sps:$4 sm:$0xff]   ;;  %v1542_v31 = vld [vmem:[#allocation5 + $0xfc] ss:$20 sps:$4 sm:$0xff]   ;;  %v1544_v32 = vld [vmem:[#allocation5 + $0xf8] ss:$20 sps:$4 sm:$0xff]  }
  0x56   :  { %365 = vmatpush1.bf16.msra.mxu0 %v1508_v6  ;;  %405 = vmatprep.subr.bf16.mxu1 %v1530_v15  ;;  %v1545_v33 = vld [vmem:[#allocation5 + $0x124] ss:$20 sps:$4 sm:$0xff]   ;;  %v1547_v34 = vld [vmem:[#allocation5 + $0x120] ss:$20 sps:$4 sm:$0xff]   ;;  %v1651_v12 = vld [vmem:[#allocation5 + $0x128] ss:$20 sps:$4 sm:$0xff]  }
  0x57   :  { %366 = vmatprep.subr.bf16.mxu0 %v1509_v7  ;;  %v1550_v35 = vld [vmem:[#allocation7 + $0x4] ss:$8 sps:$4 sm:$0xff]   ;;  %v1548_v36 = vld [vmem:[#allocation7] ss:$8 sps:$4 sm:$0xff]   ;;  %v1553_v37 = vld [vmem:[#allocation7 + $0x14] ss:$8 sps:$4 sm:$0xff]  }
  0x58   :  { %v1551_v38 = vld [vmem:[#allocation7 + $0x10] ss:$8 sps:$4 sm:$0xff]   ;;  %v1556_v39 = vld [vmem:[#allocation7 + $0x24] ss:$8 sps:$4 sm:$0xff]   ;;  %v1554_v40 = vld [vmem:[#allocation7 + $0x20] ss:$8 sps:$4 sm:$0xff]  }
  0x59   :  { %406 = vmatpush1.bf16.msra.mxu1 %v1532_v18  ;;  %v1559_v41 = vld [vmem:[#allocation7 + $0x34] ss:$8 sps:$4 sm:$0xff]   ;;  %v1557_v42 = vld [vmem:[#allocation7 + $0x30] ss:$8 sps:$4 sm:$0xff]   ;;  %v1562_v43 = vld [vmem:[#allocation7 + $0x44] ss:$8 sps:$4 sm:$0xff]  }
  0x5a   :  { %367 = vmatpush1.bf16.msra.mxu0 %v1511_v8  ;;  %407 = vmatprep.subr.bf16.mxu1 %v1533_v19  ;;  %v1560_v44 = vld [vmem:[#allocation7 + $0x40] ss:$8 sps:$4 sm:$0xff]   ;;  %v1565_v45 = vld [vmem:[#allocation7 + $0x54] ss:$8 sps:$4 sm:$0xff]   ;;  %v1563_v46 = vld [vmem:[#allocation7 + $0x50] ss:$8 sps:$4 sm:$0xff]  }
  0x5b   :  { %368 = vmatprep.subr.bf16.mxu0 %v1512_v9  ;;  %v1568_v47 = vld [vmem:[#allocation7 + $0x64] ss:$8 sps:$4 sm:$0xff]   ;;  %v1566_v48 = vld [vmem:[#allocation7 + $0x60] ss:$8 sps:$4 sm:$0xff]   ;;  %v1571_v49 = vld [vmem:[#allocation7 + $0x74] ss:$8 sps:$4 sm:$0xff]  }
  0x5c   :  { %v1569_v50 = vld [vmem:[#allocation7 + $0x70] ss:$8 sps:$4 sm:$0xff]   ;;  %v1574_v51 = vld [vmem:[#allocation7 + $0x84] ss:$8 sps:$4 sm:$0xff]   ;;  %v1572_v52 = vld [vmem:[#allocation7 + $0x80] ss:$8 sps:$4 sm:$0xff]  }
  0x5d   :  { %408 = vmatpush1.bf16.msra.mxu1 %v1535_v22  ;;  %v1577_v53 = vld [vmem:[#allocation7 + $0x94] ss:$8 sps:$4 sm:$0xff]   ;;  %v1575_v54 = vld [vmem:[#allocation7 + $0x90] ss:$8 sps:$4 sm:$0xff]   ;;  %v1580_v55 = vld [vmem:[#allocation7 + $0xa4] ss:$8 sps:$4 sm:$0xff]  }
  0x5e   :  { %369 = vmatpush1.bf16.msra.mxu0 %v1514_v13  ;;  %409 = vmatprep.subr.bf16.mxu1 %v1536_v23  ;;  %v1578_v56 = vld [vmem:[#allocation7 + $0xa0] ss:$8 sps:$4 sm:$0xff]   ;;  %v1583_v57 = vld [vmem:[#allocation7 + $0xb4] ss:$8 sps:$4 sm:$0xff]   ;;  %v1581_v58 = vld [vmem:[#allocation7 + $0xb0] ss:$8 sps:$4 sm:$0xff]  }
  0x5f   :  { %370 = vmatprep.subr.bf16.mxu0 %v1515_v16  ;;  %v1586_v59 = vld [vmem:[#allocation7 + $0xc4] ss:$8 sps:$4 sm:$0xff]   ;;  %v1584_v60 = vld [vmem:[#allocation7 + $0xc0] ss:$8 sps:$4 sm:$0xff]   ;;  %v1589_v61 = vld [vmem:[#allocation7 + $0xd4] ss:$8 sps:$4 sm:$0xff]  }
  0x60   :  { %v1587_v62 = vld [vmem:[#allocation7 + $0xd0] ss:$8 sps:$4 sm:$0xff]   ;;  %v1592_v63 = vld [vmem:[#allocation7 + $0xe4] ss:$8 sps:$4 sm:$0xff]   ;;  %v1590_v0 = vld [vmem:[#allocation7 + $0xe0] ss:$8 sps:$4 sm:$0xff]  }
  0x61   :  { %410 = vmatpush1.bf16.msra.mxu1 %v1538_v27  ;;  %v1595_v1 = vld [vmem:[#allocation7 + $0xf4] ss:$8 sps:$4 sm:$0xff]   ;;  %v1593_v2 = vld [vmem:[#allocation7 + $0xf0] ss:$8 sps:$4 sm:$0xff]   ;;  %v1598_v3 = vld [vmem:[#allocation7 + $0x104] ss:$8 sps:$4 sm:$0xff]  }
  0x62   :  { %371 = vmatpush1.bf16.msra.mxu0 %v1517_v17  ;;  %411 = vmatprep.subr.bf16.mxu1 %v1539_v28  ;;  %v1644_v4 = vld [vmem:[#allocation5 + $0x10] ss:$20 sps:$4 sm:$0xff]   ;;  %v1645_v6 = vld [vmem:[#allocation5 + $0x38] ss:$20 sps:$4 sm:$0xff]   ;;  %v1646_v7 = vld [vmem:[#allocation5 + $0x60] ss:$20 sps:$4 sm:$0xff]  }
  0x63   :  { %372 = vmatprep.subr.bf16.mxu0 %v1518_v20  ;;  %v1647_v8 = vld [vmem:[#allocation5 + $0x88] ss:$20 sps:$4 sm:$0xff]   ;;  %v1648_v9 = vld [vmem:[#allocation5 + $0xb0] ss:$20 sps:$4 sm:$0xff]   ;;  %v1649_v10 = vld [vmem:[#allocation5 + $0xd8] ss:$20 sps:$4 sm:$0xff]  }
  0x64   :  { %v1650_v11 = vld [vmem:[#allocation5 + $0x100] ss:$20 sps:$4 sm:$0xff]   ;;  %v1654_v15 = vld [vmem:[#allocation8 + $0x48] sm:$0xff]   ;;  %v1658_v19 = vld [vmem:[#allocation8 + $0x58] sm:$0xff]   ;;  %s1807_s23 = smov [#allocation10]  }
  0x65   :  { %412 = vmatpush1.bf16.msra.mxu1 %v1541_v30  ;;  %v1652_v13 = vld [vmem:[#allocation8 + $0x40] sm:$0xff]   ;;  %v1655_v16 = vld [vmem:[#allocation8 + $0x8] sm:$0xff]   ;;  %v1656_v17 = vld [vmem:[#allocation8 + $0x50] sm:$0xff]   ;;  %s1260_s24 = sshll.u32 %s1807_s23, 4  ;;  %s1261_s24 = int_to_ptr.vmem [resolvable:$true] %s1260_s24 }
  0x66   :  { %373 = vmatpush1.bf16.msra.mxu0 %v1520_v21  ;;  %413 = vmatprep.subr.bf16.mxu1 %v1542_v31  ;;  %v1653_v14 = vld [vmem:[#allocation8] sm:$0xff]   ;;  %v1657_v18 = vld [vmem:[#allocation8 + $0x10] sm:$0xff]   ;;  %v1659_v20 = vld [vmem:[#allocation8 + $0x18] sm:$0xff]   ;;  %v127_v21 = vlaneseq  ;;  %s1764_s25 = scalar_lea.vmem %s1261_s24, 128  ;;  %p1769_p5 = scmp.lt.s32.totalorder %s1261_s24, %s1261_s24 }
  0x67   :  { %374 = vmatprep.subr.bf16.mxu0 %v1521_v24  ;;  %v1660_v22 = vld [vmem:[#allocation8 + $0x60] sm:$0xff]   ;;  %v1663_v26 = vld [vmem:[#allocation8 + $0x28] sm:$0xff]   ;;  %v1907_v28 = vld [vmem:[%s1958_s4] sm:$0x1f]  ;;  %p1765_p4 = scmp.ne.s32.totalorder %s1261_s24, %s1764_s25  ;;  %p1770_p6 = scmp.lt.s32.totalorder %s1764_s25, %s1764_s25 }
  0x68   :  { %v1661_v23 = vld [vmem:[#allocation8 + $0x20] sm:$0xff]   ;;  %v1901_v24 = vshrl.u32 %v127_v21, 7  ;;  %v1641_v21 = vld [vmem:[#allocation7 + $0x1f0] ss:$8 sps:$4 sm:$0xff]  }
  0x69   :  { %414 = vmatpush1.bf16.msra.mxu1 %v1544_v32  ;;  %p1771_p7 = por %p1770_p6, %p1769_p5 }
  0x6a   :  { %375 = vmatpush1.bf16.msra.mxu0 %v1523_v25  ;;  %415 = vmatprep.subr.bf16.mxu1 %v1545_v33  ;;  %v1662_v25 = vld [vmem:[#allocation8 + $0x68] sm:$0xff]   ;;  %v129_v27 = vsub.s32 0, %v1901_v24 }
  0x6b   :  { %1440 = vmatprep.subr.bf16.mxu0 %v1805_v5  ;;  %p1772_p8 = pnand %p1771_p7, %p1765_p4 }
  0x6c   :  { %v130_v30 = vrot.slane %v1907_v28, %v129_v27 }
  0x6d   :  { %393 = vmatmul.mubr.bf16.vlgmr.msra.gmra.mrb[0].mxu0 %v1886_v29  ;;  %416 = vmatpush1.bf16.msra.mxu1 %v1547_v34 }
  0x6e   :  { %887 = vmatprep.subr.bf16.mxu1 %v1550_v35  ;;  %1441 = vmatpush3.bf16.msra.mxu0 %v1644_v4  ;;  %v1625_v4 = vld [vmem:[#allocation7 + $0x194] ss:$8 sps:$4 sm:$0xff]  }
  0x6f   :  { %1442 = vmatprep.subr.bf16.mxu0 %v1805_v5  ;;  %1456 = vmatprep.mubr.msk.bf16.mxu0 %vm1806_vm0, %v1805_v5 }
  0x70   :  { %434 = vmatmul.mubr.bf16.vlgmr.msra.gmra.mrb[0].mxu1 %v1886_v29 }
  0x71   :  { %888 = vmatpush1.bf16.msra.mxu1 %v1548_v36 }
  0x72   :  { %889 = vmatprep.subr.bf16.mxu1 %v1553_v37  ;;  %1443 = vmatpush3.bf16.msra.mxu0 %v1645_v6  ;;  %v1623_v6 = vld [vmem:[#allocation7 + $0x190] ss:$8 sps:$4 sm:$0xff]  }
  0x73   :  { %1444 = vmatprep.subr.bf16.mxu0 %v1805_v5 }
  0x75   :  { %890 = vmatpush1.bf16.msra.mxu1 %v1551_v38 }
  0x76   :  { %891 = vmatprep.subr.bf16.mxu1 %v1556_v39  ;;  %1445 = vmatpush3.bf16.msra.mxu0 %v1646_v7  ;;  %v1628_v7 = vld [vmem:[#allocation7 + $0x1a4] ss:$8 sps:$4 sm:$0xff]  }
  0x77   :  { %1446 = vmatprep.subr.bf16.mxu0 %v1805_v5 }
  0x79   :  { %892 = vmatpush1.bf16.msra.mxu1 %v1554_v40  ;;  %v141_v40 = vsub.s32 3, %v1901_v24 }
  0x7a   :  { %893 = vmatprep.subr.bf16.mxu1 %v1559_v41  ;;  %1447 = vmatpush3.bf16.msra.mxu0 %v1647_v8  ;;  %v1626_v8 = vld [vmem:[#allocation7 + $0x1a0] ss:$8 sps:$4 sm:$0xff]  }
  0x7b   :  { %1448 = vmatprep.subr.bf16.mxu0 %v1805_v5 }
  0x7d   :  { %894 = vmatpush1.bf16.msra.mxu1 %v1557_v42  ;;  %v1596_v42 = vld [vmem:[#allocation7 + $0x100] ss:$8 sps:$4 sm:$0xff]  }
  0x7e   :  { %895 = vmatprep.subr.bf16.mxu1 %v1562_v43  ;;  %1449 = vmatpush3.bf16.msra.mxu0 %v1648_v9  ;;  %v1631_v9 = vld [vmem:[#allocation7 + $0x1b4] ss:$8 sps:$4 sm:$0xff]  }
  0x7f   :  { %1450 = vmatprep.subr.bf16.mxu0 %v1805_v5 }
  0x81   :  { %896 = vmatpush1.bf16.msra.mxu1 %v1560_v44  ;;  %v1601_v44 = vld [vmem:[#allocation7 + $0x114] ss:$8 sps:$4 sm:$0xff]  }
  0x82   :  { %897 = vmatprep.subr.bf16.mxu1 %v1565_v45  ;;  %1451 = vmatpush3.bf16.msra.mxu0 %v1649_v10  ;;  %v142_v45 = vrot.slane %v1907_v28, %v141_v40  ;;  %v1629_v10 = vld [vmem:[#allocation7 + $0x1b0] ss:$8 sps:$4 sm:$0xff]  }
  0x83   :  { %1452 = vmatprep.subr.bf16.mxu0 %v1805_v5 }
  0x85   :  { %898 = vmatpush1.bf16.msra.mxu1 %v1563_v46  ;;  %v1599_v46 = vld [vmem:[#allocation7 + $0x110] ss:$8 sps:$4 sm:$0xff]  }
  0x86   :  { %899 = vmatprep.subr.bf16.mxu1 %v1568_v47  ;;  %1453 = vmatpush3.bf16.msra.mxu0 %v1650_v11  ;;  %v1604_v47 = vld [vmem:[#allocation7 + $0x124] ss:$8 sps:$4 sm:$0xff]  }
  0x87   :  { %1454 = vmatprep.subr.bf16.mxu0 %v1805_v5  ;;  %v1634_v11 = vld [vmem:[#allocation7 + $0x1c4] ss:$8 sps:$4 sm:$0xff]  }
  0x89   :  { %900 = vmatpush1.bf16.msra.mxu1 %v1566_v48 }
  0x8a   :  { %901 = vmatprep.subr.bf16.mxu1 %v1571_v49  ;;  %1455 = vmatpush3.bf16.msra.mxu0 %v1651_v12  ;;  %v1632_v12 = vld [vmem:[#allocation7 + $0x1c0] ss:$8 sps:$4 sm:$0xff]  }
  0x8b   :  { %1409 = vmatprep.subr.bf16.mxu0 %v1652_v13  ;;  %v137_v13 = vsub.s32 2, %v1901_v24 }
  0x8d   :  { %902 = vmatpush1.bf16.msra.mxu1 %v1569_v50  ;;  %1457 = vmatmul.mubr.bf16.vlgmr.msra.gmra.mrb[4].mxu0 %v1886_v29  ;;  %v133_v29 = vsub.s32 1, %v1901_v24 }
  0x8e   :  { %903 = vmatprep.subr.bf16.mxu1 %v1574_v51  ;;  %1410 = vmatpush3.bf16.msra.mxu0 %v1653_v14  ;;  %v1637_v14 = vld [vmem:[#allocation7 + $0x1d4] ss:$8 sps:$4 sm:$0xff]  }
  0x8f   :  { %1411 = vmatprep.subr.bf16.mxu0 %v1654_v15  ;;  %v134_v31 = vrot.slane %v1907_v28, %v133_v29  ;;  %v1635_v15 = vld [vmem:[#allocation7 + $0x1d0] ss:$8 sps:$4 sm:$0xff]  }
  0x91   :  { %904 = vmatpush1.bf16.msra.mxu1 %v1572_v52  ;;  %v1602_v52 = vld [vmem:[#allocation7 + $0x120] ss:$8 sps:$4 sm:$0xff]  }
  0x92   :  { %905 = vmatprep.subr.bf16.mxu1 %v1577_v53  ;;  %1412 = vmatpush3.bf16.msra.mxu0 %v1655_v16  ;;  %v138_v16 = vrot.slane %v1907_v28, %v137_v13 }
  0x93   :  { %1413 = vmatprep.subr.bf16.mxu0 %v1656_v17  ;;  %v1640_v17 = vld [vmem:[#allocation7 + $0x1e4] ss:$8 sps:$4 sm:$0xff]  }
  0x95   :  { %906 = vmatpush1.bf16.msra.mxu1 %v1575_v54  ;;  %v1607_v54 = vld [vmem:[#allocation7 + $0x134] ss:$8 sps:$4 sm:$0xff]  }
  0x96   :  { %907 = vmatprep.subr.bf16.mxu1 %v1580_v55  ;;  %1414 = vmatpush3.bf16.msra.mxu0 %v1657_v18  ;;  %v1638_v18 = vld [vmem:[#allocation7 + $0x1e0] ss:$8 sps:$4 sm:$0xff]  }
  0x97   :  { %1415 = vmatprep.subr.bf16.mxu0 %v1658_v19 }
  0x99   :  { %908 = vmatpush1.bf16.msra.mxu1 %v1578_v56 }
  0x9a   :  { %909 = vmatprep.subr.bf16.mxu1 %v1583_v57  ;;  %1416 = vmatpush3.bf16.msra.mxu0 %v1659_v20  ;;  %v1605_v57 = vld [vmem:[#allocation7 + $0x130] ss:$8 sps:$4 sm:$0xff]   ;;  %v1643_v20 = vld [vmem:[#allocation7 + $0x1f4] ss:$8 sps:$4 sm:$0xff]  }
  0x9b   :  { %1417 = vmatprep.subr.bf16.mxu0 %v1660_v22 }
  0x9d   :  { %910 = vmatpush1.bf16.msra.mxu1 %v1581_v58  ;;  %v1610_v58 = vld [vmem:[#allocation7 + $0x144] ss:$8 sps:$4 sm:$0xff]  }
  0x9e   :  { %911 = vmatprep.subr.bf16.mxu1 %v1586_v59  ;;  %1418 = vmatpush3.bf16.msra.mxu0 %v1661_v23  ;;  %v1608_v59 = vld [vmem:[#allocation7 + $0x140] ss:$8 sps:$4 sm:$0xff]  }
  0x9f   :  { %1419 = vmatprep.subr.bf16.mxu0 %v1662_v25  ;;  %v1664_v25 = vld [vmem:[#allocation8 + $0x70] sm:$0xff]  }
  0xa1   :  { %912 = vmatpush1.bf16.msra.mxu1 %v1584_v60  ;;  %v1613_v60 = vld [vmem:[#allocation7 + $0x154] ss:$8 sps:$4 sm:$0xff]  }
  0xa2   :  { %913 = vmatprep.subr.bf16.mxu1 %v1589_v61  ;;  %1420 = vmatpush3.bf16.msra.mxu0 %v1663_v26  ;;  %v1611_v61 = vld [vmem:[#allocation7 + $0x150] ss:$8 sps:$4 sm:$0xff]  }
  0xa3   :  { %v1665_v26 = vld [vmem:[#allocation8 + $0x30] sm:$0xff]   ;;  %1421 = vmatprep.subr.bf16.mxu0 %v1664_v25 }
  0xa5   :  { %914 = vmatpush1.bf16.msra.mxu1 %v1587_v62  ;;  %v1616_v62 = vld [vmem:[#allocation7 + $0x164] ss:$8 sps:$4 sm:$0xff]  }
  0xa6   :  { %915 = vmatprep.subr.bf16.mxu1 %v1592_v63  ;;  %v1614_v63 = vld [vmem:[#allocation7 + $0x160] ss:$8 sps:$4 sm:$0xff]   ;;  %1422 = vmatpush3.bf16.msra.mxu0 %v1665_v26 }
  0xa9   :  { %916 = vmatpush1.bf16.msra.mxu1 %v1590_v0  ;;  %v1619_v0 = vld [vmem:[#allocation7 + $0x174] ss:$8 sps:$4 sm:$0xff]  }
  0xaa   :  { %917 = vmatprep.subr.bf16.mxu1 %v1595_v1  ;;  %v1617_v1 = vld [vmem:[#allocation7 + $0x170] ss:$8 sps:$4 sm:$0xff]  }
  0xad   :  { %918 = vmatpush1.bf16.msra.mxu1 %v1593_v2  ;;  %v1622_v2 = vld [vmem:[#allocation7 + $0x184] ss:$8 sps:$4 sm:$0xff]  }
  0xae   :  { %928 = vmatprep.subr.bf16.mxu1 %v1598_v3  ;;  %v1620_v3 = vld [vmem:[#allocation7 + $0x180] ss:$8 sps:$4 sm:$0xff]  }
 0x140   :  { %v394_v32 = vpop.f32.mrb[0].mxu0 }
 0x141   :  { %v395_v33 = vadd.f32 %v394_v32, %v130_v30  ;;  %v396_v34 = vpop.f32.mrb[1].mxu0  ;;  %v1666_v30 = vld [vmem:[#allocation8 + $0x78] sm:$0xff]  }
 0x142   :  { %v397_v35 = vadd.f32 %v396_v34, %v134_v31  ;;  %v398_v36 = vpop.f32.mrb[2].mxu0  ;;  %v1667_v31 = vld [vmem:[#allocation8 + $0x38] sm:$0xff]   ;;  %1423 = vmatprep.subr.bf16.mxu0 %v1666_v30 }
 0x143   :  { %v482_v37 = vmax.f32 %v395_v33, 0.0  ;;  %v399_v38 = vpop.f32.mrb[3].mxu0  ;;  %v435_v48 = vpop.f32.mrb[0].mxu1  ;;  %1424 = vmatpush3.bf16.msra.mxu0 %v1667_v31  ;;  %v555_v36 = vld [vmem:[%s1958_s4 + $0x5] sm:$0x3] }
 0x144   :  { %v483_v39 = vmax.f32 %v397_v35, 0.0  ;;  %v437_v49 = vpop.f32.mrb[1].mxu1  ;;  %v436_v19 = vadd.f32 %v435_v48, %v138_v16  ;;  %1460 = vmatprep.subr.bf16.mxu0 %v1805_v5  ;;  %v564_v38 = vrot.slane %v555_v36, %v133_v29  ;;  %v1668_v48 = vld [vmem:[#allocation8 + $0x80] sm:$0xff]   ;;  %v1671_v29 = vld [vmem:[#allocation8 + $0x98] sm:$0xff]  }
 0x145   :  { %v487_v43 = vpack.c.bf16 %v482_v37, %v482_v37  ;;  %v438_v50 = vadd.f32 %v437_v49, %v142_v45  ;;  %v439_v51 = vpop.f32.mrb[2].mxu1  ;;  %v560_v37 = vrot.slane %v555_v36, %v129_v27  ;;  %v1670_v27 = vld [vmem:[#allocation8 + $0x90] sm:$0xff]  }
 0x146   :  { %v488_v41 = vpack.c.bf16 %v483_v39, %v483_v39  ;;  %v440_v53 = vpop.f32.mrb[3].mxu1  ;;  %v484_v22 = vmax.f32 %v436_v19, 0.0  ;;  %v145_v51 = vsub.s32 4, %v1901_v24 }
 0x147   :  { %v485_v55 = vmax.f32 %v438_v50, 0.0  ;;  %v1669_v50 = vld [vmem:[#allocation8 + $0x88] sm:$0xff]  }
 0x148   :  { %919 = vmatprep.mubr.bf16.mxu1 %v488_v41  ;;  %v489_v23 = vpack.c.bf16 %v484_v22, %v484_v22  ;;  %v146_v53 = vrot.slane %v1907_v28, %v145_v51 }
 0x149   :  { %920 = vmatmul.mubr.bf16.vlgmr.msra.gmra.mrb[4].mxu1 %v487_v43  ;;  %v490_v56 = vpack.c.bf16 %v485_v55, %v485_v55 }
 0x14a   :  { %929 = vmatpush1.bf16.msra.mxu1 %v1596_v42 }
 0x14b   :  { %930 = vmatprep.subr.bf16.mxu1 %v1601_v44  ;;  %960 = vmatprep.mubr.bf16.mxu1 %v490_v56  ;;  %v1674_v56 = vld [vmem:[#allocation8 + $0xb0] sm:$0xff]  }
 0x14e   :  { %931 = vmatpush1.bf16.msra.mxu1 %v1599_v46 }
 0x14f   :  { %932 = vmatprep.subr.bf16.mxu1 %v1604_v47 }
 0x152   :  { %933 = vmatpush1.bf16.msra.mxu1 %v1602_v52  ;;  %v1672_v52 = vld [vmem:[#allocation8 + $0xa0] sm:$0xff]  }
 0x153   :  { %934 = vmatprep.subr.bf16.mxu1 %v1607_v54  ;;  %v1673_v54 = vld [vmem:[#allocation8 + $0xa8] sm:$0xff]  }
 0x156   :  { %935 = vmatpush1.bf16.msra.mxu1 %v1605_v57 }
 0x157   :  { %936 = vmatprep.subr.bf16.mxu1 %v1610_v58  ;;  %v1675_v58 = vld [vmem:[#allocation8 + $0xb8] sm:$0xff]  }
 0x15a   :  { %937 = vmatpush1.bf16.msra.mxu1 %v1608_v59 }
 0x15b   :  { %938 = vmatprep.subr.bf16.mxu1 %v1613_v60 }
 0x15e   :  { %939 = vmatpush1.bf16.msra.mxu1 %v1611_v61 }
 0x15f   :  { %940 = vmatprep.subr.bf16.mxu1 %v1616_v62 }
 0x160   :  { %v476_v32 = vpop.f32.mrb[4].mxu0 }
 0x161   :  { %v1458_v33 = vpop.f32.mrb[5].mxu0  ;;  %v477_v55 = vadd.f32 %v476_v32, %v146_v53 }
 0x162   :  { %941 = vmatpush1.bf16.msra.mxu1 %v1614_v63  ;;  %v479_v34 = vpop.f32.mrb[6].mxu0  ;;  %v1375_v63 = vld [vmem:[%s1958_s4 + $0x7] ss:$0 sm:$0xff] }
 0x163   :  { %942 = vmatprep.subr.bf16.mxu1 %v1619_v0  ;;  %v1459_v35 = vpop.f32.mrb[7].mxu0  ;;  %v486_v57 = vmax.f32 %v477_v55, 0.0 }
 0x165   :  { %v973_v24 = vpack.c.bf16 %v486_v57, %v486_v57 }
 0x166   :  { %943 = vmatpush1.bf16.msra.mxu1 %v1617_v1 }
 0x167   :  { %944 = vmatprep.subr.bf16.mxu1 %v1622_v2 }
 0x16a   :  { %945 = vmatpush1.bf16.msra.mxu1 %v1620_v3 }
 0x16b   :  { %946 = vmatprep.subr.bf16.mxu1 %v1625_v4 }
 0x16e   :  { %947 = vmatpush1.bf16.msra.mxu1 %v1623_v6 }
 0x16f   :  { %948 = vmatprep.subr.bf16.mxu1 %v1628_v7 }
 0x172   :  { %949 = vmatpush1.bf16.msra.mxu1 %v1626_v8 }
 0x173   :  { %950 = vmatprep.subr.bf16.mxu1 %v1631_v9 }
 0x176   :  { %951 = vmatpush1.bf16.msra.mxu1 %v1629_v10 }
 0x177   :  { %952 = vmatprep.subr.bf16.mxu1 %v1634_v11 }
 0x17a   :  { %953 = vmatpush1.bf16.msra.mxu1 %v1632_v12 }
 0x17b   :  { %954 = vmatprep.subr.bf16.mxu1 %v1637_v14 }
 0x17e   :  { %955 = vmatpush1.bf16.msra.mxu1 %v1635_v15 }
 0x17f   :  { %956 = vmatprep.subr.bf16.mxu1 %v1640_v17 }
 0x182   :  { %957 = vmatpush1.bf16.msra.mxu1 %v1638_v18 }
 0x183   :  { %958 = vmatprep.subr.bf16.mxu1 %v1643_v20 }
 0x186   :  { %959 = vmatpush1.bf16.msra.mxu1 %v1641_v21 }
 0x189   :  { %961 = vmatmul.mubr.bf16.vlgmr.msra.gmra.mrb[4].mxu1 %v489_v23 }
 0x25c   :  { %v962_v39 = vpop.f32.mrb[4].mxu1 }
 0x25d   :  { %v1480_v40 = vadd.f32 %v962_v39, %v560_v37  ;;  %v964_v41 = vpop.f32.mrb[5].mxu1 }
 0x25e   :  { %v1481_v42 = vadd.f32 %v964_v41, %v564_v38  ;;  %v966_v43 = vpop.f32.mrb[6].mxu1 }
 0x25f   :  { %v969_v44 = vmax.f32 %v1480_v40, 0.0  ;;  %v967_v45 = vpop.f32.mrb[7].mxu1 }
 0x260   :  { %v970_v46 = vmax.f32 %v1481_v42, 0.0 }
 0x261   :  { %v971_v49 = vpack.c.bf16 %v969_v44, %v969_v44 }
 0x262   :  { %v972_v47 = vpack.c.bf16 %v970_v46, %v970_v46 }
 0x264   :  { %1205 = vmatprep.mubr.bf16.mxu0 %v972_v47 }
 0x265   :  { %1206 = vmatmul.mubr.bf16.vlgmr.msra.gmra.mrb[8].mxu0 %v971_v49 }
 0x266   :  { %1461 = vmatpush3.bf16.msra.mxu0 %v1668_v48  ;;  %1476 = vmatprep.mubr.msk.bf16.mxu0 %vm1806_vm0, %v1805_v5 }
 0x267   :  { %1462 = vmatprep.subr.bf16.mxu0 %v1805_v5 }
 0x26a   :  { %1463 = vmatpush3.bf16.msra.mxu0 %v1669_v50 }
 0x26b   :  { %1464 = vmatprep.subr.bf16.mxu0 %v1805_v5 }
 0x26e   :  { %1465 = vmatpush3.bf16.msra.mxu0 %v1670_v27 }
 0x26f   :  { %1466 = vmatprep.subr.bf16.mxu0 %v1805_v5 }
 0x272   :  { %1467 = vmatpush3.bf16.msra.mxu0 %v1671_v29 }
 0x273   :  { %1468 = vmatprep.subr.bf16.mxu0 %v1805_v5 }
 0x276   :  { %1469 = vmatpush3.bf16.msra.mxu0 %v1672_v52 }
 0x277   :  { %1470 = vmatprep.subr.bf16.mxu0 %v1805_v5 }
 0x27a   :  { %1471 = vmatpush3.bf16.msra.mxu0 %v1673_v54 }
 0x27b   :  { %1472 = vmatprep.subr.bf16.mxu0 %v1805_v5 }
 0x27e   :  { %1473 = vmatpush3.bf16.msra.mxu0 %v1674_v56 }
 0x27f   :  { %1474 = vmatprep.subr.bf16.mxu0 %v1805_v5 }
 0x282   :  { %1475 = vmatpush3.bf16.msra.mxu0 %v1675_v58 }
 0x285   :  { %1477 = vmatmul.mubr.bf16.vlgmr.msra.gmra.mrb[12].mxu0 %v973_v24 }
 0x338   :  { %v1425_v59 = vpop.f32.mrb[8].mxu0 }
 0x339   :  { %v1426_v60 = vpop.f32.mrb[9].mxu0 }
 0x33a   :  { %v1427_v28 = vadd.f32 %v1426_v60, %v1425_v59  ;;  %v1428_v61 = vpop.f32.mrb[10].mxu0 }
 0x33b   :  { %v1429_v62 = vpop.f32.mrb[11].mxu0 }
 0x33c   :  { %v1208_v0 = vadd.f32 %v1427_v28, %v1375_v63 }
 0x358   :  { %v1247_v1 = vpop.f32.mrb[12].mxu0 }
 0x359   :  { %v1248_v2 = vadd.f32 %v1247_v1, %v1208_v0  ;;  %v1478_v3 = vpop.f32.mrb[13].mxu0 }
 0x35a   :  { %v1250_v5 = vpop.f32.mrb[14].mxu0 }
 0x35b   :  { %1253 = vst [vmem:[#allocation10] sm:$0xff] %v1248_v2  ;;  %v1479_v4 = vpop.f32.mrb[15].mxu0 }
 0x35c   :  { %1775 = shalt.err (!%p1772_p8)
}
 0x35d   :  { %s1776_s4 = scalar_lea.hbm %s1959_s5, 128 }
 0x35e   :  { %p1777_p9 = scmp.ne.s32.totalorder %s1959_s5, %s1776_s4  ;;  %p1780_p10 = scmp.lt.u32.totalorder %s1776_s4, %s1959_s5 }
 0x360   :  { %p1782_p11 = pnand %p1780_p10, %p1777_p9 }
 0x362   :  { %1785 = shalt.err (!%p1782_p11)
}
 0x363   :  { %1263 = dma.vmem_to_hbm [thread:$0]  %s1261_s24, 128, %s1959_s5, [#allocation4]  }
 0x364   :  { %1792 = dma.done.wait [#allocation4], 128  }
 0x365   :  { %1793 = vsyncadd [#allocation4], 4294967168 }
 0x366   :  { %1267 = vsyncpa [#allocation3], 1 }
 0x367   :  { %1268 = vsyncpa [#allocation6], 1 }
 0x368   :  { %1269 = vsyncpa [#allocation9], 1 }
 0x369   :  { %1270 = vsyncpa [#allocation4], 1 }

</bundles_post_ra>
